<compile_context>
chip_gen: v7x
topology: tpu7x:2x2x1
jax: 0.10.0
libtpu: 0.0.40
codegen_flags: <defaults>
</compile_context>

<pallas_src>
import jax
import jax.numpy as jnp
from jax.experimental import pallas as pl
from jax.experimental.pallas import tpu as pltpu


def net_kernel(x_ref, w1_ref, b1_ref, w2_ref, b2_ref, o_ref):
    """One batch tile: fc1 -> ReLU -> (dropout, eval=identity) -> fc2 -> log_softmax."""
    # x arrives as f32 straight from HBM; cast to bf16 in-kernel (free on the
    # VPU) so no extra bf16 copy of x is ever materialized in HBM.
    x = x_ref[...].astype(jnp.bfloat16)                      # (TB, 784) bf16
    # fc1: (TB, 784) @ (784, 128) + (1, 128); f32 accumulation on the MXU.
    h = jnp.dot(x, w1_ref[...], preferred_element_type=jnp.float32) + b1_ref[...]
    h = jnp.maximum(h, 0.0)                                  # ReLU
    # Dropout(p=0.2): inference semantics -> identity.
    # TODO(synk): training-mode dropout (prng_seed/prng_random_bits mask + 1/(1-p) scale) not emitted.
    h = h.astype(jnp.bfloat16)
    # fc2: (TB, 128) @ (128, 10) + (1, 10)
    logits = jnp.dot(h, w2_ref[...], preferred_element_type=jnp.float32) + b2_ref[...]
    # log_softmax over dim=1 (numerically stable), all in f32.
    m = jnp.max(logits, axis=1, keepdims=True)
    shifted = logits - m
    lse = jnp.log(jnp.sum(jnp.exp(shifted), axis=1, keepdims=True))
    o_ref[...] = shifted - lse


def _round_up(n, m):
    return ((n + m - 1) // m) * m


def net_forward(x_nchw, w1, b1, w2, b2, *, tb=512):
    """x_nchw: (B, 1, 28, 28) float32. Returns (B, 10) float32 log-probabilities."""
    B = x_nchw.shape[0]
    K, H, C = 28 * 28, 128, 10

    # torch.flatten(x, 1). x stays f32 here; the bf16 cast happens inside the
    # kernel (see net_kernel) to avoid doubling HBM traffic on the x stream.
    x_flat = x_nchw.reshape(B, K)

    # Weights/biases: tiny, DMA'd once (constant index_map), VMEM-resident.
    w1_bf = w1.astype(jnp.bfloat16)
    w2_bf = w2.astype(jnp.bfloat16)
    b1_2d = b1.reshape(1, H).astype(jnp.float32)
    b2_2d = b2.reshape(1, C).astype(jnp.float32)

    # Batch tile selection:
    #  * default 512 rows (~85% HBM roofline vs ~60% at 256), cap at 1024 so
    #    v5e's 16 MiB scoped-VMEM default never binds,
    #  * round to 16 (bf16 vreg packing in-kernel),
    #  * shrink for tiny demo batches so 8 rows aren't padded to 512,
    #  * for moderate/large batches keep >= 2 grid steps so v7x's two
    #    TensorCores both get work under dimension_semantics=("parallel",).
    tb = max(16, min(int(tb), 1024))
    tb = min(tb, _round_up(B, 16))
    if B >= 32 and pl.cdiv(B, tb) < 2:
        tb = _round_up(pl.cdiv(B, 2), 16)

    b_pad = pl.cdiv(B, tb) * tb
    if b_pad != B:
        x_flat = jnp.pad(x_flat, ((0, b_pad - B), (0, 0)))

    grid = (b_pad // tb,)
    out = pl.pallas_call(
        net_kernel,
        out_shape=jax.ShapeDtypeStruct((b_pad, C), jnp.float32),
        grid_spec=pltpu.PrefetchScalarGridSpec(
            num_scalar_prefetch=0,
            grid=grid,
            in_specs=[
                pl.BlockSpec((tb, K), lambda i: (i, 0)),   # x: streamed f32 tile (double-buffered)
                pl.BlockSpec((K, H), lambda i: (0, 0)),    # w1: resident
                pl.BlockSpec((1, H), lambda i: (0, 0)),    # b1: resident
                pl.BlockSpec((H, C), lambda i: (0, 0)),    # w2: resident
                pl.BlockSpec((1, C), lambda i: (0, 0)),    # b2: resident
            ],
            out_specs=pl.BlockSpec((tb, C), lambda i: (i, 0)),
        ),
        compiler_params=pltpu.CompilerParams(
            dimension_semantics=("parallel",),             # v7x: shard batch steps across 2 TCs
        ),
    )(x_flat, w1_bf, b1_2d, w2_bf, b2_2d)
    return out[:B]


def reference_forward(x_nchw, w1, b1, w2, b2):
    """Pure-JAX reference with the same bf16 compute dtypes as the kernel."""
    B = x_nchw.shape[0]
    x = x_nchw.reshape(B, -1).astype(jnp.bfloat16)
    h = jnp.dot(x, w1.astype(jnp.bfloat16), preferred_element_type=jnp.float32) + b1.reshape(1, -1)
    h = jnp.maximum(h, 0.0).astype(jnp.bfloat16)
    logits = jnp.dot(h, w2.astype(jnp.bfloat16), preferred_element_type=jnp.float32) + b2.reshape(1, -1)
    return jax.nn.log_softmax(logits, axis=1)


def init_params(key):
    """Deterministic init mimicking nn.Linear's U(-1/sqrt(fan_in), 1/sqrt(fan_in))."""
    k1, k2, k3, k4 = jax.random.split(key, 4)
    fan1 = 28 * 28
    fan2 = 128
    bound1 = 1.0 / jnp.sqrt(jnp.float32(fan1))
    bound2 = 1.0 / jnp.sqrt(jnp.float32(fan2))
    # Stored as (in, out) so the kernel does x @ W (equivalent to torch's x @ W.T).
    w1 = jax.random.uniform(k1, (fan1, 128), jnp.float32, -bound1, bound1)
    b1 = jax.random.uniform(k2, (128,), jnp.float32, -bound1, bound1)
    w2 = jax.random.uniform(k3, (fan2, 10), jnp.float32, -bound2, bound2)
    b2 = jax.random.uniform(k4, (10,), jnp.float32, -bound2, bound2)
    return w1, b1, w2, b2


def _check(x, w1, b1, w2, b2):
    B = x.shape[0]
    out = jax.block_until_ready(net_forward(x, w1, b1, w2, b2))
    ref = reference_forward(x, w1, b1, w2, b2)
    row_sums = jnp.sum(jnp.exp(out), axis=1)
    assert out.shape == (B, 10)
    assert bool(jnp.all(jnp.abs(row_sums - 1.0) < 1e-4))
    assert bool(jnp.allclose(out, ref, atol=2e-2, rtol=0.0))


if __name__ == "__main__":
    key = jax.random.PRNGKey(0)
    kx1, kx2, kp = jax.random.split(key, 3)

    w1, b1, w2, b2 = init_params(kp)

    # Tiny demo batch (single grid step, tb shrinks to 16).
    x_small = jax.random.normal(kx1, (8, 1, 28, 28), jnp.float32)
    _check(x_small, w1, b1, w2, b2)

    # Slightly larger batch that exercises padding + a multi-step grid
    # (tb -> 32, grid of 2 steps, megacore-shardable on v7x).
    x_multi = jax.random.normal(kx2, (48, 1, 28, 28), jnp.float32)
    _check(x_multi, w1, b1, w2, b2)

    print("KERNEL_OK")
</pallas_src>

<mosaic_0001>
module attributes {stable_mosaic.version = 11 : i64} {
  func.func @net_kernel(%arg0: i32, %arg1: memref<16x784xf32, #tpu.memory_space<vmem>>, %arg2: memref<784x128xbf16, #tpu.memory_space<vmem>>, %arg3: memref<1x128xf32, #tpu.memory_space<vmem>>, %arg4: memref<128x10xbf16, #tpu.memory_space<vmem>>, %arg5: memref<1x10xf32, #tpu.memory_space<vmem>>, %arg6: memref<16x10xf32, #tpu.memory_space<vmem>>) attributes {dimension_semantics = [#tpu.dimension_semantics<parallel>], iteration_bounds = array<i64: 1>, scalar_prefetch = 0 : i64, scratch_operands = 0 : i64, tpu.core_type = #tpu.core_type<tc>, window_params = [{transform_indices = @transform_0, window_bounds = array<i64: 16, 784>}, {pipeline_mode = #tpu.pipeline_mode<synchronous>, transform_indices = @transform_1, window_bounds = array<i64: 784, 128>}, {pipeline_mode = #tpu.pipeline_mode<synchronous>, transform_indices = @transform_2, window_bounds = array<i64: 1, 128>}, {pipeline_mode = #tpu.pipeline_mode<synchronous>, transform_indices = @transform_3, window_bounds = array<i64: 128, 10>}, {pipeline_mode = #tpu.pipeline_mode<synchronous>, transform_indices = @transform_4, window_bounds = array<i64: 1, 10>}, {transform_indices = @transform_5, window_bounds = array<i64: 16, 10>}]} {
    %c0 = arith.constant 0 : index
    %c0_0 = arith.constant 0 : index
    %0 = vector.load %arg1[%c0, %c0_0] : memref<16x784xf32, #tpu.memory_space<vmem>>, vector<16x784xf32>
    %1 = arith.truncf %0 : vector<16x784xf32> to vector<16x784xbf16>
    %c0_1 = arith.constant 0 : index
    %c0_2 = arith.constant 0 : index
    %2 = vector.load %arg2[%c0_1, %c0_2] : memref<784x128xbf16, #tpu.memory_space<vmem>>, vector<784x128xbf16>
    %cst = arith.constant dense<0.000000e+00> : vector<16x128xf32>
    %3 = tpu.matmul %1, %2, %cst {dimension_numbers = #tpu.dot_dimension_numbers<[1], [0], [0], [1], [0, 0, 1, 1], [], []>} : vector<16x784xbf16>, vector<784x128xbf16>, vector<16x128xf32> -> vector<16x128xf32>
    %c0_3 = arith.constant 0 : index
    %c0_4 = arith.constant 0 : index
    %4 = vector.load %arg3[%c0_3, %c0_4] : memref<1x128xf32, #tpu.memory_space<vmem>>, vector<1x128xf32>
    %5 = vector.broadcast %4 : vector<1x128xf32> to vector<16x128xf32>
    %6 = arith.addf %3, %5 : vector<16x128xf32>
    %cst_5 = arith.constant 0.000000e+00 : f32
    %7 = vector.broadcast %cst_5 : f32 to vector<16x128xf32>
    %8 = arith.maximumf %6, %7 : vector<16x128xf32>
    %9 = arith.truncf %8 : vector<16x128xf32> to vector<16x128xbf16>
    %c0_6 = arith.constant 0 : index
    %c0_7 = arith.constant 0 : index
    %10 = vector.load %arg4[%c0_6, %c0_7] : memref<128x10xbf16, #tpu.memory_space<vmem>>, vector<128x10xbf16>
    %cst_8 = arith.constant dense<0.000000e+00> : vector<16x10xf32>
    %11 = tpu.matmul %9, %10, %cst_8 {dimension_numbers = #tpu.dot_dimension_numbers<[1], [0], [0], [1], [0, 0, 1, 1], [], []>} : vector<16x128xbf16>, vector<128x10xbf16>, vector<16x10xf32> -> vector<16x10xf32>
    %c0_9 = arith.constant 0 : index
    %c0_10 = arith.constant 0 : index
    %12 = vector.load %arg5[%c0_9, %c0_10] : memref<1x10xf32, #tpu.memory_space<vmem>>, vector<1x10xf32>
    %13 = vector.broadcast %12 : vector<1x10xf32> to vector<16x10xf32>
    %14 = arith.addf %11, %13 : vector<16x10xf32>
    %cst_11 = arith.constant dense<0xFF800000> : vector<16xf32>
    %15 = vector.multi_reduction <maximumf>, %14, %cst_11 [1] : vector<16x10xf32> to vector<16xf32>
    %16 = vector.shape_cast %15 : vector<16xf32> to vector<16x1xf32>
    %17 = vector.broadcast %16 : vector<16x1xf32> to vector<16x10xf32>
    %18 = arith.subf %14, %17 : vector<16x10xf32>
    %19 = math.exp %18 : vector<16x10xf32>
    %cst_12 = arith.constant dense<0.000000e+00> : vector<16xf32>
    %20 = vector.multi_reduction <add>, %19, %cst_12 [1] : vector<16x10xf32> to vector<16xf32>
    %21 = vector.shape_cast %20 : vector<16xf32> to vector<16x1xf32>
    %22 = math.log %21 : vector<16x1xf32>
    %23 = vector.broadcast %22 : vector<16x1xf32> to vector<16x10xf32>
    %24 = arith.subf %18, %23 : vector<16x10xf32>
    %c0_13 = arith.constant 0 : index
    %c0_14 = arith.constant 0 : index
    %25 = vector.load %arg6[%c0_13, %c0_14] : memref<16x10xf32, #tpu.memory_space<vmem>>, vector<16x10xf32>
    tpu.vector_store %arg6[%c0_13, %c0_14], %24 {strides = array<i32>} : memref<16x10xf32, #tpu.memory_space<vmem>>, vector<16x10xf32>,
    return
  }
  func.func @transform_0(%arg0: i32) -> (i32, i32) {
    %c0_i32 = arith.constant 0 : i32
    %c0_i32_0 = arith.constant 0 : i32
    return %arg0, %c0_i32 : i32, i32
  }
  func.func @transform_1(%arg0: i32) -> (i32, i32) {
    %c0_i32 = arith.constant 0 : i32
    %c0_i32_0 = arith.constant 0 : i32
    %c0_i32_1 = arith.constant 0 : i32
    return %c0_i32, %c0_i32_0 : i32, i32
  }
  func.func @transform_2(%arg0: i32) -> (i32, i32) {
    %c0_i32 = arith.constant 0 : i32
    %c0_i32_0 = arith.constant 0 : i32
    %c0_i32_1 = arith.constant 0 : i32
    return %c0_i32, %c0_i32_0 : i32, i32
  }
  func.func @transform_3(%arg0: i32) -> (i32, i32) {
    %c0_i32 = arith.constant 0 : i32
    %c0_i32_0 = arith.constant 0 : i32
    %c0_i32_1 = arith.constant 0 : i32
    return %c0_i32, %c0_i32_0 : i32, i32
  }
  func.func @transform_4(%arg0: i32) -> (i32, i32) {
    %c0_i32 = arith.constant 0 : i32
    %c0_i32_0 = arith.constant 0 : i32
    %c0_i32_1 = arith.constant 0 : i32
    return %c0_i32, %c0_i32_0 : i32, i32
  }
  func.func @transform_5(%arg0: i32) -> (i32, i32) {
    %c0_i32 = arith.constant 0 : i32
    %c0_i32_0 = arith.constant 0 : i32
    return %arg0, %c0_i32 : i32, i32
  }
}

</mosaic_0001>

<bundles_post_ra>
// kernel: tpu_custom_call.1
= control target key start
LH: loop header
LB: loop body
LE: loop exit
PB: predicated region body
PF: predicated region fallthrough
CT: control target
= control target key end

     0   :  { %10 = vsyncpa [#allocation3], 0  ;;  %s1235_s0 = inlined_call_operand.hbm [shape: f32[16,784], index: 0, kind: input, shape index: {}]   ;;  %s1236_s1 = inlined_call_operand.hbm [shape: bf16[784,128], index: 1, kind: input, shape index: {}]   ;;  %s1237_s2 = inlined_call_operand.vmem [shape: f32[1,128], index: 2, kind: input, shape index: {}]   ;;  %s1238_s3 = inlined_call_operand.vmem [shape: bf16[128,10], index: 3, kind: input, shape index: {}]   ;;  %s1239_s4 = inlined_call_operand.vmem [shape: f32[1,10], index: 4, kind: input, shape index: {}]   ;;  %s1240_s5 = inlined_call_operand.hbm [shape: f32[16,10], index: 5, kind: output, shape index: {}]  }
   0x1   :  { %11 = vsyncpa [#allocation6], 0 }
   0x2   :  { %12 = vsyncpa [#allocation4], 0  ;;  %s1109_s18 = smov [#allocation2]   ;;  %s1037_s22 = scalar_lea.hbm %s1235_s0, 1792 }
   0x3   :  { %s18_s19 = sshll.u32 %s1109_s18, 4  ;;  %p1038_p0 = scmp.ne.s32.totalorder %s1235_s0, %s1037_s22  ;;  %s19_s19 = int_to_ptr.vmem [resolvable:$true] %s18_s19 }
   0x4   :  { %p1041_p1 = scmp.lt.u32.totalorder %s1037_s22, %s1235_s0 }
   0x6   :  { %p1043_p2 = pnand %p1041_p1, %p1038_p0 }
   0x8   :  { %1046 = shalt.err (!%p1043_p2)
}
   0x9   :  { %s1047_s27 = scalar_lea.vmem %s19_s19, 1792  ;;  %p1052_p4 = scmp.lt.s32.totalorder %s19_s19, %s19_s19 }
   0xa   :  { %p1048_p3 = scmp.ne.s32.totalorder %s19_s19, %s1047_s27  ;;  %p1053_p5 = scmp.lt.s32.totalorder %s1047_s27, %s1047_s27 }
   0xc   :  { %p1054_p6 = por %p1053_p5, %p1052_p4 }
   0xe   :  { %p1055_p7 = pnand %p1054_p6, %p1048_p3 }
  0x10   :  { %1058 = shalt.err (!%p1055_p7)
}
  0x11   :  { %s1110_s28 = smov 896   ;;  %s1111_s29 = smov 56  }
  0x12   :  { %24 = dma.hbm_to_vmem [thread:$0]  %s1235_s0, 1792, %s19_s19, [#allocation3], %s1110_s28, %s1110_s28, %s1111_s29  }
  0x13   :  { %s1112_s7 = smov [#allocation5]   ;;  %s1059_s11 = scalar_lea.hbm %s1236_s1, 6272 }
  0x14   :  { %s30_s8 = sshll.u32 %s1112_s7, 4  ;;  %p1060_p8 = scmp.ne.s32.totalorder %s1236_s1, %s1059_s11  ;;  %s31_s8 = int_to_ptr.vmem [resolvable:$true] %s30_s8 }
  0x15   :  { %p1063_p9 = scmp.lt.u32.totalorder %s1059_s11, %s1236_s1 }
  0x17   :  { %p1065_p10 = pnand %p1063_p9, %p1060_p8 }
  0x19   :  { %1068 = shalt.err (!%p1065_p10)
}
  0x1a   :  { %s1069_s16 = scalar_lea.vmem %s31_s8, 6272  ;;  %p1074_p12 = scmp.lt.s32.totalorder %s31_s8, %s31_s8 }
  0x1b   :  { %p1070_p11 = scmp.ne.s32.totalorder %s31_s8, %s1069_s16  ;;  %p1075_p13 = scmp.lt.s32.totalorder %s1069_s16, %s1069_s16 }
  0x1d   :  { %p1076_p0 = por %p1075_p13, %p1074_p12 }
  0x1f   :  { %p1077_p1 = pnand %p1076_p0, %p1070_p11 }
  0x21   :  { %1080 = shalt.err (!%p1077_p1)
}
  0x22   :  { %s1113_s0 = smov 64   ;;  %s1114_s17 = smov 4  }
  0x23   :  { %36 = dma.hbm_to_vmem [thread:$0]  %s1236_s1, 6272, %s31_s8, [#allocation6], %s1113_s0, %s1113_s0, %s1114_s17  }
  0x24   :  { %1103 = dma.done.wait [#allocation3], 1792  }
  0x25   :  { %1104 = vsyncadd [#allocation3], 4294965504 }
  0x26   :  { %1105 = dma.done.wait [#allocation6], 6272  }
  0x27   :  { %1106 = vsyncadd [#allocation6], 4294961024  ;;  %v972_v0 = vld [vmem:[#allocation5 + $0x40] sm:$0xff]   ;;  %v976_v4 = vld [vmem:[#allocation5 + $0x48] sm:$0xff]   ;;  %v1115_v43 = vmov 0.0   ;;  %vm1116_vm0 = vmmov 0  }
  0x28   :  { %v973_v1 = vld [vmem:[#allocation5] sm:$0xff]   ;;  %858 = vmatprep.subr.bf16.mxu0 %v972_v0  ;;  %v977_v5 = vld [vmem:[#allocation5 + $0x8] sm:$0xff]   ;;  %v980_v8 = vld [vmem:[#allocation5 + $0x50] sm:$0xff]   ;;  %vm470_vm1 = vcmask 130048   ;;  %vm753_vm2 = vcmask 80896  }
  0x29   :  { %v974_v2 = vld [vmem:[#allocation5 + $0xc0] sm:$0xff]   ;;  %859 = vmatpush3.bf16.msra.mxu0 %v973_v1  ;;  %v978_v6 = vld [vmem:[#allocation5 + $0xc8] sm:$0xff]   ;;  %v981_v9 = vld [vmem:[#allocation5 + $0x10] sm:$0xff]  }
  0x2a   :  { %v975_v3 = vld [vmem:[#allocation5 + $0x80] sm:$0xff]   ;;  %880 = vmatprep.subr.bf16.mxu1 %v974_v2  ;;  %860 = vmatprep.subr.bf16.mxu0 %v976_v4  ;;  %v979_v7 = vld [vmem:[#allocation5 + $0x88] sm:$0xff]   ;;  %v982_v10 = vld [vmem:[#allocation5 + $0xd0] sm:$0xff]  }
  0x2b   :  { %881 = vmatpush3.bf16.msra.mxu1 %v975_v3  ;;  %v983_v11 = vld [vmem:[#allocation5 + $0x90] sm:$0xff]   ;;  %v984_v12 = vld [vmem:[#allocation5 + $0x58] sm:$0xff]   ;;  %v988_v16 = vld [vmem:[#allocation5 + $0x60] sm:$0xff]  }
  0x2c   :  { %882 = vmatprep.subr.bf16.mxu1 %v978_v6  ;;  %v985_v13 = vld [vmem:[#allocation5 + $0x18] sm:$0xff]   ;;  %v989_v17 = vld [vmem:[#allocation5 + $0x20] sm:$0xff]   ;;  %v992_v20 = vld [vmem:[#allocation5 + $0x68] sm:$0xff]  }
  0x2d   :  { %861 = vmatpush3.bf16.msra.mxu0 %v977_v5  ;;  %v986_v14 = vld [vmem:[#allocation5 + $0xd8] sm:$0xff]   ;;  %v990_v18 = vld [vmem:[#allocation5 + $0xe0] sm:$0xff]   ;;  %v993_v21 = vld [vmem:[#allocation5 + $0x28] sm:$0xff]  }
  0x2e   :  { %862 = vmatprep.subr.bf16.mxu0 %v980_v8  ;;  %v987_v15 = vld [vmem:[#allocation5 + $0x98] sm:$0xff]   ;;  %v991_v19 = vld [vmem:[#allocation5 + $0xa0] sm:$0xff]   ;;  %v994_v22 = vld [vmem:[#allocation5 + $0xe8] sm:$0xff]  }
  0x2f   :  { %883 = vmatpush3.bf16.msra.mxu1 %v979_v7  ;;  %v995_v23 = vld [vmem:[#allocation5 + $0xa8] sm:$0xff]   ;;  %v996_v24 = vld [vmem:[#allocation5 + $0x70] sm:$0xff]   ;;  %v1000_v28 = vld [vmem:[#allocation5 + $0x78] sm:$0xff]  }
  0x30   :  { %884 = vmatprep.subr.bf16.mxu1 %v982_v10  ;;  %v997_v25 = vld [vmem:[#allocation5 + $0x30] sm:$0xff]   ;;  %v1001_v29 = vld [vmem:[#allocation5 + $0x38] sm:$0xff]   ;;  %v57_v36 = vld [vmem:[#allocation2 + $0x38] sm:$0xff] }
  0x31   :  { %863 = vmatpush3.bf16.msra.mxu0 %v981_v9  ;;  %v998_v26 = vld [vmem:[#allocation5 + $0xf0] sm:$0xff]   ;;  %v1002_v30 = vld [vmem:[#allocation5 + $0xf8] sm:$0xff]   ;;  %v1004_v38 = vld [vmem:[#allocation5 + $0x140] sm:$0xff]  }
  0x32   :  { %864 = vmatprep.subr.bf16.mxu0 %v984_v12  ;;  %v999_v27 = vld [vmem:[#allocation5 + $0xb0] sm:$0xff]   ;;  %v51_v31 = vld [vmem:[#allocation2 + $0x8] sm:$0xff]  ;;  %v53_v39 = vld [vmem:[#allocation2 + $0x18] sm:$0xff] }
  0x33   :  { %885 = vmatpush3.bf16.msra.mxu1 %v983_v11  ;;  %v58_v32 = vld [vmem:[#allocation2 + $0x40] sm:$0xff]  ;;  %v1003_v34 = vld [vmem:[#allocation5 + $0xb8] sm:$0xff]   ;;  %v60_v40 = vld [vmem:[#allocation2 + $0x50] sm:$0xff] }
  0x34   :  { %886 = vmatprep.subr.bf16.mxu1 %v986_v14  ;;  %v65_v33 = vpack.c.bf16 %v58_v32, %v51_v31  ;;  %v50_v35 = vld [vmem:[#allocation2] sm:$0xff]  ;;  %v67_v41 = vpack.c.bf16 %v60_v40, %v53_v39  ;;  %v1005_v42 = vld [vmem:[#allocation5 + $0x100] sm:$0xff]   ;;  %v59_v45 = vld [vmem:[#allocation2 + $0x48] sm:$0xff] }
  0x35   :  { %865 = vmatpush3.bf16.msra.mxu0 %v985_v13  ;;  %v64_v37 = vpack.c.bf16 %v57_v36, %v50_v35  ;;  %v52_v44 = vld [vmem:[#allocation2 + $0x10] sm:$0xff]  ;;  %v1006_v47 = vld [vmem:[#allocation5 + $0x148] sm:$0xff]   ;;  %v1008_v49 = vld [vmem:[#allocation5 + $0x150] sm:$0xff]  }
  0x36   :  { %866 = vmatprep.subr.bf16.mxu0 %v988_v16  ;;  %506 = vmatprep.mubr.bf16.mxu0 %v65_v33  ;;  %v66_v46 = vpack.c.bf16 %v59_v45, %v52_v44  ;;  %v1007_v48 = vld [vmem:[#allocation5 + $0x108] sm:$0xff]   ;;  %v1009_v50 = vld [vmem:[#allocation5 + $0x110] sm:$0xff]   ;;  %v1010_v51 = vld [vmem:[#allocation5 + $0x158] sm:$0xff]  }
  0x37   :  { %887 = vmatpush3.bf16.msra.mxu1 %v987_v15  ;;  %547 = vmatprep.mubr.bf16.mxu1 %v67_v41  ;;  %v1011_v52 = vld [vmem:[#allocation5 + $0x118] sm:$0xff]   ;;  %v1012_v53 = vld [vmem:[#allocation5 + $0x160] sm:$0xff]   ;;  %v1014_v55 = vld [vmem:[#allocation5 + $0x168] sm:$0xff]  }
  0x38   :  { %888 = vmatprep.subr.bf16.mxu1 %v990_v18  ;;  %v1013_v54 = vld [vmem:[#allocation5 + $0x120] sm:$0xff]   ;;  %v55_v57 = vld [vmem:[#allocation2 + $0x28] sm:$0xff]  ;;  %v1015_v58 = vld [vmem:[#allocation5 + $0x128] sm:$0xff]  }
  0x39   :  { %867 = vmatpush3.bf16.msra.mxu0 %v989_v17  ;;  %v1020_v56 = vld [vmem:[#allocation5 + $0x180] sm:$0xff]   ;;  %v1016_v59 = vld [vmem:[#allocation5 + $0x170] sm:$0xff]   ;;  %v63_v63 = vld [vmem:[#allocation2 + $0x68] sm:$0xff] }
  0x3a   :  { %868 = vmatprep.subr.bf16.mxu0 %v992_v20  ;;  %v62_v60 = vld [vmem:[#allocation2 + $0x60] sm:$0xff]  ;;  %v56_v62 = vld [vmem:[#allocation2 + $0x30] sm:$0xff]  ;;  %v1018_v2 = vld [vmem:[#allocation5 + $0x178] sm:$0xff]  }
  0x3b   :  { %889 = vmatpush3.bf16.msra.mxu1 %v991_v19  ;;  %v69_v61 = vpack.c.bf16 %v62_v60, %v55_v57  ;;  %v70_v0 = vpack.c.bf16 %v63_v63, %v56_v62  ;;  %v1017_v1 = vld [vmem:[#allocation5 + $0x130] sm:$0xff]   ;;  %v1019_v3 = vld [vmem:[#allocation5 + $0x138] sm:$0xff]   ;;  %v61_v5 = vld [vmem:[#allocation2 + $0x58] sm:$0xff] }
  0x3c   :  { %890 = vmatprep.subr.bf16.mxu1 %v994_v22  ;;  %v54_v4 = vld [vmem:[#allocation2 + $0x20] sm:$0xff]  ;;  %v1022_v8 = vld [vmem:[%s1238_s3 + $0x8] sm:$0xff]   ;;  %v1023_v9 = vld [vmem:[%s1238_s3 + $0x10] sm:$0xff]  }
  0x3d   :  { %869 = vmatpush3.bf16.msra.mxu0 %v993_v21  ;;  %v68_v6 = vpack.c.bf16 %v61_v5, %v54_v4  ;;  %v1021_v7 = vld [vmem:[%s1238_s3] sm:$0xff]   ;;  %v1024_v10 = vld [vmem:[%s1238_s3 + $0x18] sm:$0xff]   ;;  %v1026_v12 = vld [vmem:[%s1238_s3 + $0x28] sm:$0xff]  }
  0x3e   :  { %870 = vmatprep.subr.bf16.mxu0 %v996_v24  ;;  %v1025_v11 = vld [vmem:[%s1238_s3 + $0x20] sm:$0xff]   ;;  %v1027_v13 = vld [vmem:[%s1238_s3 + $0x30] sm:$0xff]   ;;  %v1028_v14 = vld [vmem:[%s1238_s3 + $0x38] sm:$0xff]  }
  0x3f   :  { %891 = vmatpush3.bf16.msra.mxu1 %v995_v23  ;;  %v798_v16 = vld [vmem:[%s1237_s2] ss:$0 sm:$0xff] }
  0x40   :  { %892 = vmatprep.subr.bf16.mxu1 %v998_v26 }
  0x41   :  { %871 = vmatpush3.bf16.msra.mxu0 %v997_v25 }
  0x42   :  { %872 = vmatprep.subr.bf16.mxu0 %v1000_v28 }
  0x43   :  { %893 = vmatpush3.bf16.msra.mxu1 %v999_v27 }
  0x44   :  { %894 = vmatprep.subr.bf16.mxu1 %v1002_v30 }
  0x45   :  { %873 = vmatpush3.bf16.msra.mxu0 %v1001_v29 }
  0x46   :  { %902 = vmatprep.subr.bf16.mxu0 %v1004_v38 }
  0x47   :  { %895 = vmatpush3.bf16.msra.mxu1 %v1003_v34 }
  0x48   :  { %935 = vmatprep.subr.bf16.mxu1 %v1115_v43  ;;  %507 = vmatmul.mubr.bf16.vlgmr.msra.gmra.mrb[0].mxu0 %v64_v37 }
  0x49   :  { %903 = vmatpush3.bf16.msra.mxu0 %v1005_v42  ;;  %588 = vmatprep.mubr.bf16.mxu0 %v69_v61 }
  0x4a   :  { %548 = vmatmul.mubr.bf16.vlgmr.msra.gmra.mrb[0].mxu1 %v66_v46  ;;  %904 = vmatprep.subr.bf16.mxu0 %v1006_v47 }
  0x4b   :  { %937 = vmatprep.mubr.msk.bf16.mxu1 %vm1116_vm0, %v1115_v43  ;;  %936 = vmatpush3.bf16.msra.mxu1 %v1020_v56 }
  0x4c   :  { %941 = vmatprep.subr.bf16.mxu1 %v1115_v43 }
  0x4d   :  { %905 = vmatpush3.bf16.msra.mxu0 %v1007_v48 }
  0x4e   :  { %906 = vmatprep.subr.bf16.mxu0 %v1008_v49  ;;  %v849_v49 = vld [vmem:[%s1239_s4] ss:$0 sm:$0xff]  ;;  %s1117_s4 = smov [#allocation7]  }
  0x4f   :  { %s785_s12 = sshll.u32 %s1117_s4, 4  ;;  %s786_s12 = int_to_ptr.vmem [resolvable:$true] %s785_s12 }
  0x50   :  { %s1081_s13 = scalar_lea.vmem %s786_s12, 256  ;;  %p1086_p3 = scmp.lt.s32.totalorder %s786_s12, %s786_s12 }
  0x51   :  { %907 = vmatpush3.bf16.msra.mxu0 %v1009_v50  ;;  %p1082_p2 = scmp.ne.s32.totalorder %s786_s12, %s1081_s13  ;;  %p1087_p4 = scmp.lt.s32.totalorder %s1081_s13, %s1081_s13 }
  0x52   :  { %908 = vmatprep.subr.bf16.mxu0 %v1010_v51  ;;  %938 = vmatmul.mubr.msk.bf16.vlgmr.msra.gmra.mrb[4].mxu1 %vm470_vm1, %v70_v0 }
  0x53   :  { %957 = vmatprep.mubr.msk.bf16.mxu1 %vm1116_vm0, %v1115_v43  ;;  %942 = vmatpush3.bf16.msra.mxu1 %v1021_v7  ;;  %p1088_p5 = por %p1087_p4, %p1086_p3 }
  0x54   :  { %943 = vmatprep.subr.bf16.mxu1 %v1115_v43 }
  0x55   :  { %909 = vmatpush3.bf16.msra.mxu0 %v1011_v52  ;;  %p1089_p6 = pnand %p1088_p5, %p1082_p2 }
  0x56   :  { %910 = vmatprep.subr.bf16.mxu0 %v1012_v53 }
  0x57   :  { %944 = vmatpush3.bf16.msra.mxu1 %v1022_v8 }
  0x58   :  { %945 = vmatprep.subr.bf16.mxu1 %v1115_v43 }
  0x59   :  { %911 = vmatpush3.bf16.msra.mxu0 %v1013_v54 }
  0x5a   :  { %912 = vmatprep.subr.bf16.mxu0 %v1014_v55 }
  0x5b   :  { %946 = vmatpush3.bf16.msra.mxu1 %v1023_v9 }
  0x5c   :  { %947 = vmatprep.subr.bf16.mxu1 %v1115_v43 }
  0x5d   :  { %913 = vmatpush3.bf16.msra.mxu0 %v1015_v58 }
  0x5e   :  { %914 = vmatprep.subr.bf16.mxu0 %v1016_v59 }
  0x5f   :  { %948 = vmatpush3.bf16.msra.mxu1 %v1024_v10 }
  0x60   :  { %949 = vmatprep.subr.bf16.mxu1 %v1115_v43 }
  0x61   :  { %915 = vmatpush3.bf16.msra.mxu0 %v1017_v1 }
  0x62   :  { %916 = vmatprep.subr.bf16.mxu0 %v1018_v2 }
  0x63   :  { %950 = vmatpush3.bf16.msra.mxu1 %v1025_v11 }
  0x64   :  { %951 = vmatprep.subr.bf16.mxu1 %v1115_v43 }
  0x65   :  { %917 = vmatpush3.bf16.msra.mxu0 %v1019_v3 }
  0x67   :  { %952 = vmatpush3.bf16.msra.mxu1 %v1026_v12 }
  0x68   :  { %589 = vmatmul.mubr.bf16.vlgmr.msra.gmra.mrb[4].mxu0 %v68_v6  ;;  %953 = vmatprep.subr.bf16.mxu1 %v1115_v43 }
  0x6b   :  { %954 = vmatpush3.bf16.msra.mxu1 %v1027_v13 }
  0x6c   :  { %955 = vmatprep.subr.bf16.mxu1 %v1115_v43 }
  0x6f   :  { %956 = vmatpush3.bf16.msra.mxu1 %v1028_v14 }
 0x11b   :  { %v874_v15 = vpop.f32.mrb[0].mxu0 }
 0x11c   :  { %v875_v17 = vpop.f32.mrb[1].mxu0 }
 0x11d   :  { %v876_v18 = vadd.f32 %v875_v17, %v874_v15  ;;  %v877_v19 = vpop.f32.mrb[2].mxu0  ;;  %v896_v20 = vpop.f32.mrb[0].mxu1 }
 0x11e   :  { %v878_v21 = vpop.f32.mrb[3].mxu0  ;;  %v897_v24 = vpop.f32.mrb[1].mxu1 }
 0x11f   :  { %v509_v22 = vadd.f32 %v876_v18, %v798_v16  ;;  %v879_v23 = vadd.f32 %v878_v21, %v877_v19  ;;  %v898_v25 = vadd.f32 %v897_v24, %v896_v20  ;;  %v899_v26 = vpop.f32.mrb[2].mxu1 }
 0x120   :  { %v900_v28 = vpop.f32.mrb[3].mxu1 }
 0x121   :  { %v512_v27 = vadd.f32 %v879_v23, %v798_v16  ;;  %v550_v29 = vadd.f32 %v898_v25, %v509_v22  ;;  %v901_v30 = vadd.f32 %v900_v28, %v899_v26 }
 0x123   :  { %v553_v31 = vadd.f32 %v901_v30, %v512_v27 }
 0x125   :  { %v631_v32 = vpop.f32.mrb[4].mxu1 }
 0x126   :  { %v939_v33 = vpop.f32.mrb[5].mxu1 }
 0x127   :  { %v634_v34 = vpop.f32.mrb[6].mxu1 }
 0x128   :  { %v940_v35 = vpop.f32.mrb[7].mxu1 }
 0x13b   :  { %v918_v36 = vpop.f32.mrb[4].mxu0 }
 0x13c   :  { %v919_v37 = vpop.f32.mrb[5].mxu0 }
 0x13d   :  { %v920_v38 = vadd.f32 %v919_v37, %v918_v36  ;;  %v921_v39 = vpop.f32.mrb[6].mxu0 }
 0x13e   :  { %v922_v40 = vpop.f32.mrb[7].mxu0 }
 0x13f   :  { %v591_v41 = vadd.f32 %v920_v38, %v550_v29  ;;  %v923_v42 = vadd.f32 %v922_v40, %v921_v39 }
 0x141   :  { %v632_v43 = vadd.f32 %v631_v32, %v591_v41  ;;  %v594_v44 = vadd.f32 %v923_v42, %v553_v31 }
 0x143   :  { %v635_v45 = vadd.f32 %v634_v34, %v594_v44  ;;  %v638_v46 = vmax.f32 %v632_v43, 0.0 }
 0x145   :  { %v639_v47 = vmax.f32 %v635_v45, 0.0 }
 0x147   :  { %v640_v48 = vpack.c.bf16 %v639_v47, %v638_v46 }
 0x149   :  { %958 = vmatmul.mubr.bf16.vlgmr.msra.gmra.mrb[8].mxu1 %v640_v48 }
 0x21c   :  { %v746_v50 = vpop.f32.mrb[8].mxu1 }
 0x21d   :  { %v747_v51 = vadd.f32 %v849_v49, %v746_v50  ;;  %v959_v52 = vpop.f32.mrb[9].mxu1 }
 0x21e   :  { %v749_v53 = vpop.f32.mrb[10].mxu1 }
 0x21f   :  { %v750_v54 = vadd.f32 %v849_v49, %v749_v53  ;;  %v960_v55 = vpop.f32.mrb[11].mxu1  ;;  %v754_v56 = vsel %vm753_vm2, %v747_v51, -inf }
 0x220   :  { %755 = vmax.xlane.f32.xlu0 %v754_v56 }
 0x221   :  { %v757_v57 = vsel %vm753_vm2, %v750_v54, -inf }
 0x224   :  { %758 = vmax.xlane.f32.xlu0 %v757_v57 }
 0x2ad   :  { %v756_v58 = vpop.xlane.xlu0 %755 }
 0x2ae   :  { %v760_v59 = vsub.f32 %v747_v51, %v756_v58 }
 0x2b0   :  { %v762_v60 = vmul.f32 1.442695, %v760_v59 }
 0x2b1   :  { %v759_v61 = vpop.xlane.xlu0 %758 }
 0x2b2   :  { %1029 = vpow2.f32 %v762_v60  ;;  %v761_v62 = vsub.f32 %v750_v54, %v759_v61 }
 0x2b4   :  { %v764_v63 = vmul.f32 1.442695, %v761_v62 }
 0x2b6   :  { %1031 = vpow2.f32 %v764_v63 }
 0x2bc   :  { %v1030_v0 = vpop.eup %1029 }
 0x2bd   :  { %v766_v1 = vsel %vm753_vm2, %v1030_v0, 0.0 }
 0x2be   :  { %767 = vadd.xlane.f32.xlu1 %v766_v1 }
 0x2c0   :  { %v1032_v2 = vpop.eup %1031 }
 0x2c1   :  { %v769_v3 = vsel %vm753_vm2, %v1032_v2, 0.0 }
 0x2c2   :  { %770 = vadd.xlane.f32.xlu1 %v769_v3 }
 0x34b   :  { %v768_v4 = vpop.xlane.xlu1 %767 }
 0x34c   :  { %1033 = vlog2.f32 %v768_v4 }
 0x34f   :  { %v771_v5 = vpop.xlane.xlu1 %770 }
 0x350   :  { %1035 = vlog2.f32 %v771_v5 }
 0x356   :  { %v1034_v6 = vpop.eup %1033 }
 0x357   :  { %v773_v7 = vmul.f32 0.6931472, %v1034_v6 }
 0x359   :  { %v776_v8 = vsub.f32 %v760_v59, %v773_v7 }
 0x35a   :  { %v1036_v9 = vpop.eup %1035 }
 0x35b   :  { %778 = vst.msk [vmem:[#allocation7] sm:$0xff] %vm753_vm2, %v776_v8  ;;  %v775_v10 = vmul.f32 0.6931472, %v1036_v9 }
 0x35d   :  { %v777_v11 = vsub.f32 %v761_v62, %v775_v10 }
 0x35f   :  { %779 = vst.msk [vmem:[#allocation7 + $0x8] sm:$0xff] %vm753_vm2, %v777_v11 }
 0x360   :  { %1092 = shalt.err (!%p1089_p6)
}
 0x361   :  { %s1093_s16 = scalar_lea.hbm %s1240_s5, 256 }
 0x362   :  { %p1094_p7 = scmp.ne.s32.totalorder %s1240_s5, %s1093_s16  ;;  %p1097_p8 = scmp.lt.u32.totalorder %s1093_s16, %s1240_s5 }
 0x364   :  { %p1099_p9 = pnand %p1097_p8, %p1094_p7 }
 0x366   :  { %1102 = shalt.err (!%p1099_p9)
}
 0x367   :  { %s1118_s1 = smov 128   ;;  %s1119_s20 = smov 8  }
 0x368   :  { %791 = dma.vmem_to_hbm [thread:$0]  %s786_s12, 256, %s1240_s5, [#allocation4], %s1118_s1, %s1118_s1, %s1119_s20  }
 0x369   :  { %1107 = dma.done.wait [#allocation4], 256  }
 0x36a   :  { %1108 = vsyncadd [#allocation4], 4294967040 }
 0x36b   :  { %795 = vsyncpa [#allocation3], 1 }
 0x36c   :  { %796 = vsyncpa [#allocation6], 1 }
 0x36d   :  { %797 = vsyncpa [#allocation4], 1 }

</bundles_post_ra>
